<compile_context>
chip_gen: v7x
topology: tpu7x:2x2x1
jax: 0.10.0
libtpu: 0.0.40
codegen_flags: <defaults>
</compile_context>

<pallas_src>
import functools

import jax
import jax.numpy as jnp
from jax import lax
from jax.experimental import pallas as pl
from jax.experimental.pallas import tpu as pltpu


def _attn_kernel(q_ref, k_ref, v_ref, o_ref, m_ref, l_ref, acc_ref, *,
                 scale, compute_dtype):
    # q_ref:   (C, TQ)    query tile, channel-major
    # k_ref:   (C, TKV)   key tile, channel-major
    # v_ref:   (C, TKV)   value tile, channel-major
    # o_ref:   (C, TQ)    output tile (lane-dense store)
    # m_ref:   (1, TQ)    running max  (f32 scratch)
    # l_ref:   (1, TQ)    running sum  (f32 scratch)
    # acc_ref: (C, TQ)    running P@V  (f32 scratch)
    kv = pl.program_id(2)

    @pl.when(kv == 0)
    def _():
        m_ref[...] = jnp.full(m_ref.shape, -jnp.inf, dtype=m_ref.dtype)
        l_ref[...] = jnp.zeros(l_ref.shape, dtype=l_ref.dtype)
        acc_ref[...] = jnp.zeros(acc_ref.shape, dtype=acc_ref.dtype)

    qs = (q_ref[...] * scale).astype(compute_dtype)          # (C, TQ)
    k = k_ref[...].astype(compute_dtype)                     # (C, TKV)

    # s[j, t] = sum_c k[c, j] * q[c, t]  -> (TKV, TQ), f32 accumulation.
    s = lax.dot_general(k, qs, (((0,), (0,)), ((), ())),
                        preferred_element_type=jnp.float32)

    # Online softmax over the kv axis (axis 0 == sublanes); stats stay (1, TQ).
    m_prev = m_ref[...]
    m_new = jnp.maximum(m_prev, jnp.max(s, axis=0, keepdims=True))
    alpha = jnp.exp(m_prev - m_new)                          # (1, TQ)
    p = jnp.exp(s - m_new)                                   # (TKV, TQ) f32

    l_ref[...] = alpha * l_ref[...] + jnp.sum(p, axis=0, keepdims=True)

    # PV in canonical (M,K)@(K,N) form: (C, TKV) @ (TKV, TQ) -> (C, TQ).
    # No transpose of the large probability matrix is required.
    pv = lax.dot_general(v_ref[...].astype(compute_dtype),
                         p.astype(compute_dtype),
                         (((1,), (0,)), ((), ())),
                         preferred_element_type=jnp.float32)
    acc_ref[...] = alpha * acc_ref[...] + pv
    m_ref[...] = m_new

    @pl.when(kv == pl.num_programs(2) - 1)
    def _():
        inv = pl.reciprocal(l_ref[...], approx=True)         # (1, TQ), EUP vrcp
        o_ref[...] = (acc_ref[...] * inv).astype(o_ref.dtype)


def _pick_tile(hw, candidates):
    for t in candidates:
        if hw >= t and hw % t == 0:
            return t
    # TODO(synk): pad/mask the spatial axis when HW is not a multiple of 128
    # instead of falling back to a single full-extent tile.
    return hw


def single_head_attention_normal(x_shape, q, k, v, dim_channels, *,
                                 tq=None, tkv=None, compute_dtype=None):
    """Pallas TPU implementation of SingleHeadAttentionNormal.forward.

    q, k, v: NCHW arrays of shape (B, dim_channels, H, W).
    Returns an NCHW array of shape (B, dim_channels, H, W).
    """
    batch_size, _, height, width = x_shape
    hw = height * width
    c = dim_channels
    scale = float(c) ** (-0.5)

    # Channel-major: (B, C, H, W) -> (B, C, HW) is a free reshape.
    q_r = q.reshape(batch_size, c, hw)
    k_r = k.reshape(batch_size, c, hw)
    v_r = v.reshape(batch_size, c, hw)

    if tq is None:
        tq = _pick_tile(hw, (128,))        # 128 fills v5e's MXU; safe everywhere
    if tkv is None:
        tkv = _pick_tile(hw, (512, 128))   # deep kv tiles when divisible
    num_q = hw // tq
    num_kv = hw // tkv

    if compute_dtype is None:
        # bf16 MXU operands (f32 accumulation) only in the MXU-bound regime;
        # small C is EUP/VPU bound and f32 keeps v5e happy.
        compute_dtype = (jnp.bfloat16
                         if (q.dtype == jnp.float32 and c >= 64) else q.dtype)

    kernel = functools.partial(_attn_kernel, scale=scale,
                               compute_dtype=compute_dtype)

    itemsize = jnp.dtype(q.dtype).itemsize
    cost = pl.CostEstimate(
        flops=4 * batch_size * c * hw * hw,
        transcendentals=batch_size * hw * hw + 2 * batch_size * hw * num_kv,
        bytes_accessed=itemsize * batch_size * c * hw * (2 + 2 * num_q),
    )

    h = pl.pallas_call(
        kernel,
        out_shape=jax.ShapeDtypeStruct((batch_size, c, hw), q.dtype),
        grid_spec=pltpu.PrefetchScalarGridSpec(
            num_scalar_prefetch=0,
            grid=(batch_size, num_q, num_kv),
            in_specs=[
                pl.BlockSpec((pl.Squeezed(), c, tq),
                             lambda b, qi, ki: (b, 0, qi)),
                pl.BlockSpec((pl.Squeezed(), c, tkv),
                             lambda b, qi, ki: (b, 0, ki)),
                pl.BlockSpec((pl.Squeezed(), c, tkv),
                             lambda b, qi, ki: (b, 0, ki)),
            ],
            out_specs=pl.BlockSpec((pl.Squeezed(), c, tq),
                                   lambda b, qi, ki: (b, 0, qi)),
            scratch_shapes=[
                pltpu.VMEM((1, tq), jnp.float32),   # running max
                pltpu.VMEM((1, tq), jnp.float32),   # running sum (denominator)
                pltpu.VMEM((c, tq), jnp.float32),   # running P@V accumulator
            ],
        ),
        compiler_params=pltpu.CompilerParams(
            dimension_semantics=("parallel", "parallel", "arbitrary"),
        ),
        cost_estimate=cost,
    )(q_r, k_r, v_r)

    # (B, C, HW) -> (B, C, H, W): free reshape, no transpose needed.
    return h.reshape(batch_size, c, height, width)


def _reference(x_shape, q, k, v, dim_channels):
    batch_size, _, height, width = x_shape
    hw = height * width
    c = dim_channels
    scale = float(c) ** (-0.5)
    q_r = jnp.transpose(q, (0, 2, 3, 1)).reshape(batch_size, hw, c)
    k_r = k.reshape(batch_size, c, hw)
    v_r = jnp.transpose(v, (0, 2, 3, 1)).reshape(batch_size, hw, c)
    w = jnp.einsum("bqc,bck->bqk", q_r, k_r) * scale
    w = jax.nn.softmax(w, axis=-1)
    h = jnp.einsum("bqk,bkc->bqc", w, v_r)
    return jnp.transpose(h.reshape(batch_size, height, width, c), (0, 3, 1, 2))


if __name__ == "__main__":
    batch, channels, height, width = 2, 4, 16, 16  # dim_channels = 4, HW = 256
    x_shape = (batch, channels, height, width)

    key = jax.random.PRNGKey(0)
    kq, kk, kv = jax.random.split(key, 3)
    q = jax.random.normal(kq, x_shape, dtype=jnp.float32)
    k = jax.random.normal(kk, x_shape, dtype=jnp.float32)
    v = jax.random.normal(kv, x_shape, dtype=jnp.float32)

    out = single_head_attention_normal(x_shape, q, k, v, dim_channels=channels)
    out = jax.block_until_ready(out)

    ref = _reference(x_shape, q, k, v, dim_channels=channels)
    assert out.shape == (batch, channels, height, width)
    # tolerance accommodates the approx-reciprocal softmax denominator
    assert jnp.allclose(out, ref, atol=2e-3, rtol=2e-3), float(
        jnp.max(jnp.abs(out - ref)))

    print("KERNEL_OK")
</pallas_src>

<mosaic_0001>
module attributes {stable_mosaic.version = 11 : i64} {
  func.func @_attn_kernel(%arg0: i32, %arg1: i32, %arg2: i32, %arg3: memref<1x4x128xf32, #tpu.memory_space<vmem>>, %arg4: memref<1x4x128xf32, #tpu.memory_space<vmem>>, %arg5: memref<1x4x128xf32, #tpu.memory_space<vmem>>, %arg6: memref<1x4x128xf32, #tpu.memory_space<vmem>>, %arg7: memref<1x128xf32, #tpu.memory_space<vmem>>, %arg8: memref<1x128xf32, #tpu.memory_space<vmem>>, %arg9: memref<4x128xf32, #tpu.memory_space<vmem>>) attributes {dimension_semantics = [#tpu.dimension_semantics<parallel>, #tpu.dimension_semantics<parallel>, #tpu.dimension_semantics<arbitrary>], iteration_bounds = array<i64: 2, 2, 2>, scalar_prefetch = 0 : i64, scratch_operands = 3 : i64, tpu.core_type = #tpu.core_type<tc>, window_params = [{transform_indices = @transform_0, window_bounds = array<i64: 1, 4, 128>}, {transform_indices = @transform_1, window_bounds = array<i64: 1, 4, 128>}, {transform_indices = @transform_2, window_bounds = array<i64: 1, 4, 128>}, {transform_indices = @transform_3, window_bounds = array<i64: 1, 4, 128>}]} {
    %c0_i32 = arith.constant 0 : i32
    %0 = arith.cmpi eq, %arg2, %c0_i32 : i32
    %1 = arith.extui %0 : i1 to i32
    %c0_i32_0 = arith.constant 0 : i32
    %2 = arith.cmpi ne, %1, %c0_i32_0 : i32
    scf.if %2 {
      %cst_26 = arith.constant 0xFF800000 : f32
      %37 = vector.broadcast %cst_26 : f32 to vector<1x128xf32>
      %c0_27 = arith.constant 0 : index
      %c0_28 = arith.constant 0 : index
      %38 = vector.load %arg7[%c0_27, %c0_28] : memref<1x128xf32, #tpu.memory_space<vmem>>, vector<1x128xf32>
      tpu.vector_store %arg7[%c0_27, %c0_28], %37 {strides = array<i32>} : memref<1x128xf32, #tpu.memory_space<vmem>>, vector<1x128xf32>,
      %cst_29 = arith.constant 0.000000e+00 : f32
      %39 = vector.broadcast %cst_29 : f32 to vector<1x128xf32>
      %c0_30 = arith.constant 0 : index
      %c0_31 = arith.constant 0 : index
      %40 = vector.load %arg8[%c0_30, %c0_31] : memref<1x128xf32, #tpu.memory_space<vmem>>, vector<1x128xf32>
      tpu.vector_store %arg8[%c0_30, %c0_31], %39 {strides = array<i32>} : memref<1x128xf32, #tpu.memory_space<vmem>>, vector<1x128xf32>,
      %cst_32 = arith.constant 0.000000e+00 : f32
      %41 = vector.broadcast %cst_32 : f32 to vector<4x128xf32>
      %c0_33 = arith.constant 0 : index
      %c0_34 = arith.constant 0 : index
      %42 = vector.load %arg9[%c0_33, %c0_34] : memref<4x128xf32, #tpu.memory_space<vmem>>, vector<4x128xf32>
      tpu.vector_store %arg9[%c0_33, %c0_34], %41 {strides = array<i32>} : memref<4x128xf32, #tpu.memory_space<vmem>>, vector<4x128xf32>,
    } else {
    }
    %c0 = arith.constant 0 : index
    %c0_1 = arith.constant 0 : index
    %c0_2 = arith.constant 0 : index
    %3 = vector.load %arg3[%c0, %c0_1, %c0_2] : memref<1x4x128xf32, #tpu.memory_space<vmem>>, vector<1x4x128xf32>
    %4 = vector.shape_cast %3 : vector<1x4x128xf32> to vector<4x128xf32>
    %cst = arith.constant 5.000000e-01 : f32
    %5 = vector.broadcast %cst : f32 to vector<4x128xf32>
    %6 = arith.mulf %4, %5 : vector<4x128xf32>
    %c0_3 = arith.constant 0 : index
    %c0_4 = arith.constant 0 : index
    %c0_5 = arith.constant 0 : index
    %7 = vector.load %arg4[%c0_3, %c0_4, %c0_5] : memref<1x4x128xf32, #tpu.memory_space<vmem>>, vector<1x4x128xf32>
    %8 = vector.shape_cast %7 : vector<1x4x128xf32> to vector<4x128xf32>
    %cst_6 = arith.constant dense<0.000000e+00> : vector<128x128xf32>
    %9 = tpu.matmul %8, %6, %cst_6 {dimension_numbers = #tpu.dot_dimension_numbers<[0], [0], [1], [1], [0, 1, 1, 1], [], []>} : vector<4x128xf32>, vector<4x128xf32>, vector<128x128xf32> -> vector<128x128xf32>
    %c0_7 = arith.constant 0 : index
    %c0_8 = arith.constant 0 : index
    %10 = vector.load %arg7[%c0_7, %c0_8] : memref<1x128xf32, #tpu.memory_space<vmem>>, vector<1x128xf32>
    %cst_9 = arith.constant dense<0xFF800000> : vector<128xf32>
    %11 = vector.multi_reduction <maximumf>, %9, %cst_9 [0] : vector<128x128xf32> to vector<128xf32>
    %12 = vector.shape_cast %11 : vector<128xf32> to vector<1x128xf32>
    %13 = arith.maximumf %10, %12 : vector<1x128xf32>
    %14 = arith.subf %10, %13 : vector<1x128xf32>
    %15 = math.exp %14 : vector<1x128xf32>
    %16 = vector.broadcast %13 : vector<1x128xf32> to vector<128x128xf32>
    %17 = arith.subf %9, %16 : vector<128x128xf32>
    %18 = math.exp %17 : vector<128x128xf32>
    %c0_10 = arith.constant 0 : index
    %c0_11 = arith.constant 0 : index
    %19 = vector.load %arg8[%c0_10, %c0_11] : memref<1x128xf32, #tpu.memory_space<vmem>>, vector<1x128xf32>
    %20 = arith.mulf %15, %19 : vector<1x128xf32>
    %cst_12 = arith.constant dense<0.000000e+00> : vector<128xf32>
    %21 = vector.multi_reduction <add>, %18, %cst_12 [0] : vector<128x128xf32> to vector<128xf32>
    %22 = vector.shape_cast %21 : vector<128xf32> to vector<1x128xf32>
    %23 = arith.addf %20, %22 : vector<1x128xf32>
    %c0_13 = arith.constant 0 : index
    %c0_14 = arith.constant 0 : index
    %24 = vector.load %arg8[%c0_13, %c0_14] : memref<1x128xf32, #tpu.memory_space<vmem>>, vector<1x128xf32>
    tpu.vector_store %arg8[%c0_13, %c0_14], %23 {strides = array<i32>} : memref<1x128xf32, #tpu.memory_space<vmem>>, vector<1x128xf32>,
    %c0_15 = arith.constant 0 : index
    %c0_16 = arith.constant 0 : index
    %c0_17 = arith.constant 0 : index
    %25 = vector.load %arg5[%c0_15, %c0_16, %c0_17] : memref<1x4x128xf32, #tpu.memory_space<vmem>>, vector<1x4x128xf32>
    %26 = vector.shape_cast %25 : vector<1x4x128xf32> to vector<4x128xf32>
    %cst_18 = arith.constant dense<0.000000e+00> : vector<4x128xf32>
    %27 = tpu.matmul %26, %18, %cst_18 {dimension_numbers = #tpu.dot_dimension_numbers<[1], [0], [0], [1], [0, 0, 1, 1], [], []>} : vector<4x128xf32>, vector<128x128xf32>, vector<4x128xf32> -> vector<4x128xf32>
    %c0_19 = arith.constant 0 : index
    %c0_20 = arith.constant 0 : index
    %28 = vector.load %arg9[%c0_19, %c0_20] : memref<4x128xf32, #tpu.memory_space<vmem>>, vector<4x128xf32>
    %29 = vector.broadcast %15 : vector<1x128xf32> to vector<4x128xf32>
    %30 = arith.mulf %29, %28 : vector<4x128xf32>
    %31 = arith.addf %30, %27 : vector<4x128xf32>
    %c0_21 = arith.constant 0 : index
    %c0_22 = arith.constant 0 : index
    %32 = vector.load %arg9[%c0_21, %c0_22] : memref<4x128xf32, #tpu.memory_space<vmem>>, vector<4x128xf32>
    tpu.vector_store %arg9[%c0_21, %c0_22], %31 {strides = array<i32>} : memref<4x128xf32, #tpu.memory_space<vmem>>, vector<4x128xf32>,
    %c0_23 = arith.constant 0 : index
    %c0_24 = arith.constant 0 : index
    %33 = vector.load %arg7[%c0_23, %c0_24] : memref<1x128xf32, #tpu.memory_space<vmem>>, vector<1x128xf32>
    tpu.vector_store %arg7[%c0_23, %c0_24], %13 {strides = array<i32>} : memref<1x128xf32, #tpu.memory_space<vmem>>, vector<1x128xf32>,
    %c1_i32 = arith.constant 1 : i32
    %34 = arith.cmpi eq, %arg2, %c1_i32 : i32
    %35 = arith.extui %34 : i1 to i32
    %c0_i32_25 = arith.constant 0 : i32
    %36 = arith.cmpi ne, %35, %c0_i32_25 : i32
    scf.if %36 {
      %c0_26 = arith.constant 0 : index
      %c0_27 = arith.constant 0 : index
      %37 = vector.load %arg8[%c0_26, %c0_27] : memref<1x128xf32, #tpu.memory_space<vmem>>, vector<1x128xf32>
      %38 = tpu.reciprocal %37 {approx = true} : vector<1x128xf32> -> vector<1x128xf32>
      %c0_28 = arith.constant 0 : index
      %c0_29 = arith.constant 0 : index
      %39 = vector.load %arg9[%c0_28, %c0_29] : memref<4x128xf32, #tpu.memory_space<vmem>>, vector<4x128xf32>
      %40 = vector.broadcast %38 : vector<1x128xf32> to vector<4x128xf32>
      %41 = arith.mulf %39, %40 : vector<4x128xf32>
      %c0_30 = arith.constant 0 : index
      %c0_31 = arith.constant 0 : index
      %c0_32 = arith.constant 0 : index
      %42 = vector.load %arg6[%c0_30, %c0_31, %c0_32] : memref<1x4x128xf32, #tpu.memory_space<vmem>>, vector<1x4x128xf32>
      %43 = vector.shape_cast %42 : vector<1x4x128xf32> to vector<4x128xf32>
      %44 = vector.shape_cast %41 : vector<4x128xf32> to vector<1x4x128xf32>
      tpu.vector_store %arg6[%c0_30, %c0_31, %c0_32], %44 {strides = array<i32>} : memref<1x4x128xf32, #tpu.memory_space<vmem>>, vector<1x4x128xf32>,
    } else {
    }
    return
  }
  func.func @transform_0(%arg0: i32, %arg1: i32, %arg2: i32) -> (i32, i32, i32) {
    %c0_i32 = arith.constant 0 : i32
    %c0_i32_0 = arith.constant 0 : i32
    return %arg0, %c0_i32, %arg1 : i32, i32, i32
  }
  func.func @transform_1(%arg0: i32, %arg1: i32, %arg2: i32) -> (i32, i32, i32) {
    %c0_i32 = arith.constant 0 : i32
    %c0_i32_0 = arith.constant 0 : i32
    return %arg0, %c0_i32, %arg2 : i32, i32, i32
  }
  func.func @transform_2(%arg0: i32, %arg1: i32, %arg2: i32) -> (i32, i32, i32) {
    %c0_i32 = arith.constant 0 : i32
    %c0_i32_0 = arith.constant 0 : i32
    return %arg0, %c0_i32, %arg2 : i32, i32, i32
  }
  func.func @transform_3(%arg0: i32, %arg1: i32, %arg2: i32) -> (i32, i32, i32) {
    %c0_i32 = arith.constant 0 : i32
    %c0_i32_0 = arith.constant 0 : i32
    return %arg0, %c0_i32, %arg1 : i32, i32, i32
  }
}

</mosaic_0001>

<bundles_post_ra>
// kernel: tpu_custom_call.1
= control target key start
LH: loop header
LB: loop body
LE: loop exit
PB: predicated region body
PF: predicated region fallthrough
CT: control target
= control target key end

     0   :  { %s1935_s0 = inlined_call_operand.hbm [shape: f32[2,4,256], index: 0, kind: input, shape index: {}]   ;;  %s1936_s1 = inlined_call_operand.hbm [shape: f32[2,4,256], index: 1, kind: input, shape index: {}]   ;;  %s1937_s2 = inlined_call_operand.hbm [shape: f32[2,4,256], index: 2, kind: input, shape index: {}]   ;;  %s1938_s3 = inlined_call_operand.hbm [shape: f32[2,4,256], index: 3, kind: output, shape index: {}]  }
   0x1   :  { %1966 = sst [smem:[#allocation31_spill]] %s1936_s1 }
   0x2   :  { %1967 = sst [smem:[#allocation32_spill]] %s1938_s3 }
   0x3   :  { %8 = vsyncpa [#allocation6], 0 }
   0x4   :  { %10 = vsyncpa [#allocation6 + $0x1], 0 }
   0x5   :  { %11 = vsyncpa [#allocation9], 0 }
   0x6   :  { %13 = vsyncpa [#allocation9 + $0x1], 0 }
   0x7   :  { %14 = vsyncpa [#allocation7], 0 }
   0x8   :  { %16 = vsyncpa [#allocation7 + $0x1], 0  ;;  %s1479_s12 = smov 0   ;;  %s1481_s13 = smov 0  }
   0x9   :  { %s1483_s14 = smov 0   ;;  %s1485_s15 = smov 0  }
   0xa   :  { %s1487_s16 = smov 0   ;;  %s1489_s17 = smov 0  }
   0xb   :  { %s1491_s18 = smov 0   ;;  %s1493_s19 = smov 0  }
   0xc   :  { %s1495_s20 = smov 0   ;;  %s1497_s21 = smov 0  }
   0xd   :  { %s1499_s22 = smov 0   ;;  %s1501_s23 = smov 0  }
   0xe   :  { %s1503_s24 = smov 0  }
   0xf LB: > { %1968 = sst [smem:[#allocation15_spill]] %s1404_s13  ;;  %s1543_s25 = sadd.s32 4294967295, %s1448_s24   ;;  %s1448_s24 = sphi %s1503_s24, %s22_s24   ;;  %s1444_s23 = sphi %s1501_s23, %s2044_s23   ;;  %s1440_s22 = sphi %s1499_s22, %s2043_s22   ;;  %s1436_s21 = sphi %s1497_s21, %s2042_s21   ;;  %s1432_s20 = sphi %s1495_s20, %s2041_s20   ;;  %s1428_s19 = sphi %s1493_s19, %s2040_s19   ;;  %s1424_s18 = sphi %s1491_s18, %s2039_s18   ;;  %s1420_s17 = sphi %s1489_s17, %s2038_s17   ;;  %s1416_s16 = sphi %s1487_s16, %s2037_s16   ;;  %s1412_s15 = sphi %s1485_s15, %s2030_s15   ;;  %s1408_s14 = sphi %s1483_s14, %s2036_s14   ;;  %s1404_s13 = sphi %s1481_s13, %s2035_s13   ;;  %s1400_s12 = sphi %s1479_s12, %s2029_s12  }
  0x10   : > { %1969 = sst [smem:[#allocation16_spill]] %s1412_s15  ;;  %s34_s26 = sadd.s32 1, %s1436_s21 }
  0x11   : > { %1970 = sst [smem:[#allocation17_spill]] %s1416_s16  ;;  %p1546_p0 = scmp.ge.s32.totalorder %s34_s26, 2 }
  0x12   : > { %1971 = sst [smem:[#allocation18_spill]] %s1424_s18  ;;  %p1944_p1 = scmp.eq.s32.totalorder %s1448_s24, 0 }
  0x13   : > { %1972 = sst [smem:[#allocation19_spill]] %s1428_s19  ;;  %p1943_p2 = scmp.eq.s32.totalorder %s1543_s25, 0 }
  0x14   : > { %1973 = sst [smem:[#allocation20_spill]] %s1432_s20  ;;  %s2046_s26 = smov (%p1546_p0, %s34_s26), 0 }
  0x15   : > { %1974 = sst [smem:[#allocation21_spill]] %s1543_s25  ;;  %p85_p3 = scmp.ne.s32.totalorder %s1408_s14, %s1404_s13 }
  0x16   : > { %p91_p4 = scmp.ne.s32.totalorder %s1404_s13, %s1400_s12  ;;  %p1942_p7 = scmp.lt.s32.totalorder %s1448_s24, 8 }
  0x17   : > { %p1563_p5 = por %p85_p3, %p1944_p1  ;;  %s1939_s5 = sshll.u32 %s1444_s23, 1 }
  0x18   : > { %p1569_p6 = por %p91_p4, %p1943_p2  ;;  %s191_s6 = sand.u32 1, %s1448_s24  }
  0x19   : > { %s193_s7 = sand.u32 1, %s1408_s14   ;;  %s1582_s9 = sadd.s32 %s1436_s21, %s1939_s5 }
  0x1a   : > { %s1977_s4 = scalar_select %p1569_p6, 1, 0 }
  0x1b   : > { %s1577_s8 = sshll.u32 %s193_s7, 2  ;;  %s1941_s10 = sshll.u32 %s1582_s9, 6 }
  0x1c   : > { %1978 = sst [smem:[#allocation22_spill]] %s1977_s4  ;;  %s1979_s1 = sld [smem:[#allocation31_spill]] }
  0x1d   : > { %s195_s28 = scalar_lea.vmem [#allocation8], %s1577_s8  ;;  %p1599_p8 = pnand %p1942_p7, %p1563_p5 }
  0x1e   : > { %s204_s7 = sshll.u32 %s195_s28, 4  ;;  %s1606_s11 = scalar_lea.sflag [#allocation9], %s191_s6  ;;  %s1593_s7 = int_to_ptr.vmem [resolvable:$true] %s204_s7 }
  0x1f   : > { %s1980_s5 = scalar_select %p1599_p8, 1, 0 }
  0x20   : > { %1982 = sst [smem:[#allocation24_spill]] %s1606_s11  ;;  %p1963_p11 = pneg %p1599_p8 }
  0x21   : > { %1981 = sst [smem:[#allocation23_spill]] %s1980_s5 }
  0x22   : > { %s1590_s29 = scalar_lea.hbm %s1979_s1, %s1941_s10  ;;  %s1221_s10 = scalar_lea.hbm %s1979_s1, 256 }
  0x23   : > { %s1216_s12 = scalar_lea.hbm %s1590_s29, 64  ;;  %p1222_p3 = scmp.lt.u32.totalorder %s1590_s29, %s1979_s1 }
  0x24   : > { %p1217_p10 = scmp.ne.s32.totalorder %s1590_s29, %s1216_s12  ;;  %p1223_p4 = scmp.lt.u32.totalorder %s1221_s10, %s1216_s12 }
  0x25   : > { %p1225_p7 = scmp.lt.u32.totalorder %s1216_s12, %s1590_s29 }
  0x26   : > { %p1219_p12 = pnand %p1963_p11, %p1217_p10  ;;  %p1224_p5 = por %p1223_p4, %p1222_p3 }
  0x28   : > { %p1220_p13 = pneg %p1219_p12  ;;  %p1226_p2 = por %p1225_p7, %p1224_p5 }
  0x2a   : > { %p1227_p1 = pnand %p1226_p2, %p1220_p13 }
  0x2c   : > { %1230 = shalt.err (!%p1227_p1)
}
  0x2d   : > { %s1231_s6 = scalar_lea.vmem %s1593_s7, 64  ;;  %s1450_s28 = smov [#allocation8]  }
  0x2e   : > { %p1232_p10 = scmp.ne.s32.totalorder %s1593_s7, %s1231_s6  ;;  %s1236_s30 = sshll.u32 %s1450_s28, 4  ;;  %s1237_s30 = int_to_ptr.vmem [resolvable:$false] %s1236_s30 }
  0x2f   : > { %s1238_s19 = scalar_lea.vmem %s1237_s30, 128  ;;  %p1239_p6 = scmp.lt.s32.totalorder %s1593_s7, %s1237_s30 }
  0x30   : > { %p1234_p12 = pnand %p1232_p10, %p1963_p11  ;;  %p1240_p3 = scmp.lt.s32.totalorder %s1238_s19, %s1231_s6 }
  0x32   : > { %p1235_p9 = pneg %p1234_p12  ;;  %p1241_p4 = por %p1240_p3, %p1239_p6 }
  0x34   : > { %p1242_p7 = pnand %p1241_p4, %p1235_p9 }
  0x36   : > { %1245 = shalt.err (!%p1242_p7)
}
  0x37   : > { %1061 = dma.hbm_to_vmem [thread:$0]  (!%p1599_p8), %s1590_s29, 64, %s1593_s7, %s1606_s11  }
  0x38   : > { %p229_p1 = scmp.lt.s32.totalorder %s1448_s24, 9  ;;  %p1983_p2 = scmp.ge.s32.totalorder %s1448_s24, 1 }
  0x39   : > { %s887_s10 = sadd.s32 4294967294, %s1448_s24   ;;  %s37_s12 = sadd.s32 1, %s1440_s22 }
  0x3a   : > { %p1637_p6 = pnand %p1983_p2, %p229_p1  ;;  %s2048_s12 = smov (!%p1546_p0, %s37_s12), %s1440_s22 }
  0x3b   : > { %s50_s6 = sadd.s32 1, %s1420_s17  ;;  %p57_p9 = scmp.ne.s32.totalorder %s1420_s17, %s1416_s16 }
  0x3c   : > { %s1984_s20 = scalar_select %p1637_p6, 1, 0 }
  0x3d   : > { %p39_p13 = scmp.ge.s32.totalorder %s2048_s12, 2  ;;  %p63_p5 = scmp.ne.s32.totalorder %s1416_s16, %s1412_s15 }
  0x3e   : > { %1985 = sst [smem:[#allocation25_spill]] %s1984_s20  ;;  %p1986_p10 = scmp.eq.s32.totalorder %s1448_s24, 0 }
  0x3f   : > { %p145_p3 = scmp.eq.s32.totalorder %s1543_s25, 7  ;;  %s2050_s12 = smov (%p39_p13, %s2048_s12), 0 }
  0x40   : > { %p1653_p12 = por %p1986_p10, %p57_p9  ;;  %1988 = sst [smem:[#allocation26_spill]] %s2050_s12 }
  0x41   : > { %s1989_s7 = sadd.s32 1, %s1444_s23  ;;  %s46_s27 = ssub.s32 %s1440_s22, %s2050_s12 }
  0x42   : > { %s2052_s7 = smov (!%p39_p13, %s1989_s7), %s1444_s23  ;;  %p1990_p0 = scmp.eq.s32.totalorder %s1543_s25, 0 }
  0x43   : > { %p43_p7 = scmp.ge.s32.totalorder %s2052_s7, 2  ;;  %p1671_p1 = por %p145_p3, %p57_p9 }
  0x44   : > { %p1667_p4 = por %p1990_p0, %p63_p5  ;;  %p151_p2 = scmp.eq.s32.totalorder %s887_s10, 7 }
  0x45   : > { %s1993_s30 = scalar_select %p1671_p1, 1, 0 }
  0x46   : > { %s1991_s28 = scalar_select %p1667_p4, 1, 0 }
  0x47   : > { %1994 = sst [smem:[#allocation28_spill]] %s1993_s30  ;;  %s171_s19 = sand.u32 1, %s1420_s17  }
  0x48   : > { %1992 = sst [smem:[#allocation27_spill]] %s1991_s28  ;;  %s2054_s7 = smov (%p43_p7, %s2052_s7), 0 }
  0x49   : > { %1995 = sst [smem:[#allocation29_spill]] %s2054_s7  ;;  %p1678_p13 = por %p151_p2, %p63_p5 }
  0x4a   : > { %s45_s1 = ssub.s32 %s1444_s23, %s2054_s7  ;;  %s890_s12 = sshll.u32 %s171_s19, 2 }
  0x4b   : > { %s1996_s3 = scalar_select %p1678_p13, 1, 0 }
  0x4c   : > { %s47_s15 = sor.u32 %s46_s27, %s45_s1  ;;  %s1998_s18 = ssub.s32 %s1436_s21, %s2046_s26 }
  0x4d   : > { %1997 = sst [smem:[#allocation30_spill]] %s1996_s3  ;;  %s75_s4 = sor.u32 %s1998_s18, %s45_s1 }
  0x4e   : > { %p48_p9 = scmp.eq.s32.totalorder %s47_s15, 0  ;;  %p76_p10 = scmp.eq.s32.totalorder %s75_s4, 0 }
  0x4f   : > { %s1999_s10 = sshll.u32 %s1444_s23, 1  ;;  %s2000_s25 = sadd.s32 1, %s1408_s14 }
  0x50   : > { %s180_s30 = sadd.s32 %s1440_s22, %s1999_s10  ;;  %s175_s20 = scalar_lea.vmem [#allocation5], %s890_s12 }
  0x51   : > { %s1691_s13 = scalar_select %p48_p9, %s1420_s17, %s50_s6  }
  0x52   : > { %s1696_s28 = scalar_select %p76_p10, %s1408_s14, %s2000_s25  }
  0x53   : > { %s892_s16 = sshll.u32 %s180_s30, 6  ;;  %s184_s11 = sshll.u32 %s175_s20, 4  ;;  %s1703_s11 = int_to_ptr.vmem [resolvable:$true] %s184_s11 }
  0x54   : > { %s1701_s7 = scalar_lea.hbm %s1935_s0, %s892_s16  ;;  %p2001_p5 = scmp.lt.s32.totalorder %s1448_s24, 8 }
  0x55   : > { %s215_s15 = scalar_lea.vmem [#allocation10], %s1577_s8  ;;  %s2003_s25 = sshll.u32 %s1582_s9, 6 }
  0x56   : > { %p1709_p3 = pnand %p2001_p5, %p1653_p12  ;;  %s224_s18 = sshll.u32 %s215_s15, 4  ;;  %s1721_s18 = int_to_ptr.vmem [resolvable:$true] %s224_s18 }
  0x57   : > { %s1719_s4 = scalar_lea.hbm %s1937_s2, %s2003_s25  ;;  %s172_s5 = scalar_lea.sflag [#allocation6], %s171_s19 }
  0x58   : > { %s1246_s20 = scalar_lea.hbm %s1701_s7, 64  ;;  %p1248_p12 = pneg %p1709_p3 }
  0x59   : > { %p1247_p0 = scmp.ne.s32.totalorder %s1701_s7, %s1246_s20  ;;  %s1251_s9 = scalar_lea.hbm %s1935_s0, 256 }
  0x5a   : > { %p1252_p9 = scmp.lt.u32.totalorder %s1701_s7, %s1935_s0  ;;  %p1253_p10 = scmp.lt.u32.totalorder %s1251_s9, %s1246_s20 }
  0x5b   : > { %p1249_p7 = pnand %p1248_p12, %p1247_p0  ;;  %p1255_p11 = scmp.lt.u32.totalorder %s1246_s20, %s1701_s7 }
  0x5c   : > { %p1254_p5 = por %p1253_p10, %p1252_p9 }
  0x5d   : > { %p1250_p2 = pneg %p1249_p7 }
  0x5e   : > { %p1256_p13 = por %p1255_p11, %p1254_p5 }
  0x60   : > { %p1257_p1 = pnand %p1256_p13, %p1250_p2 }
  0x62   : > { %1260 = shalt.err (!%p1257_p1)
}
  0x63   : > { %s1261_s27 = scalar_lea.vmem %s1703_s11, 64  ;;  %s1451_s30 = smov [#allocation5]  }
  0x64   : > { %p1262_p0 = scmp.ne.s32.totalorder %s1703_s11, %s1261_s27  ;;  %s1266_s19 = sshll.u32 %s1451_s30, 4  ;;  %s1267_s19 = int_to_ptr.vmem [resolvable:$false] %s1266_s19 }
  0x65   : > { %s1268_s10 = scalar_lea.vmem %s1267_s19, 128  ;;  %p1269_p6 = scmp.lt.s32.totalorder %s1703_s11, %s1267_s19 }
  0x66   : > { %p1264_p7 = pnand %p1262_p0, %p1248_p12  ;;  %p1270_p9 = scmp.lt.s32.totalorder %s1268_s10, %s1261_s27 }
  0x68   : > { %p1265_p4 = pneg %p1264_p7  ;;  %p1271_p10 = por %p1270_p9, %p1269_p6 }
  0x6a   : > { %p1272_p11 = pnand %p1271_p10, %p1265_p4 }
  0x6c   : > { %1275 = shalt.err (!%p1272_p11)
}
  0x6d   : > { %1058 = dma.hbm_to_vmem [thread:$0]  (!%p1709_p3), %s1701_s7, 64, %s1703_s11, %s172_s5  }
  0x6e   : > { %s1276_s25 = scalar_lea.hbm %s1719_s4, 64  ;;  %p2005_p13 = pneg %p1599_p8 }
  0x6f   : > { %p1277_p1 = scmp.ne.s32.totalorder %s1719_s4, %s1276_s25  ;;  %s1281_s20 = scalar_lea.hbm %s1937_s2, 256 }
  0x70   : > { %p1282_p6 = scmp.lt.u32.totalorder %s1719_s4, %s1937_s2  ;;  %p1283_p4 = scmp.lt.u32.totalorder %s1281_s20, %s1276_s25 }
  0x71   : > { %p1279_p12 = pnand %p1277_p1, %p2005_p13  ;;  %p1285_p0 = scmp.lt.u32.totalorder %s1276_s25, %s1719_s4 }
  0x72   : > { %p1284_p5 = por %p1283_p4, %p1282_p6 }
  0x73   : > { %p1280_p2 = pneg %p1279_p12 }
  0x74   : > { %p1286_p7 = por %p1285_p0, %p1284_p5 }
  0x76   : > { %p1287_p9 = pnand %p1286_p7, %p1280_p2 }
  0x78   : > { %1290 = shalt.err (!%p1287_p9)
}
  0x79   : > { %s1291_s11 = scalar_lea.vmem %s1721_s18, 64  ;;  %p2006_p10 = pmov %p2005_p13 }
  0x7a   : > { %p1292_p3 = scmp.ne.s32.totalorder %s1721_s18, %s1291_s11  ;;  %s1452_s7 = smov [#allocation10]  }
  0x7b   : > { %s1296_s5 = sshll.u32 %s1452_s7, 4  ;;  %s1297_s5 = int_to_ptr.vmem [resolvable:$false] %s1296_s5 }
  0x7c   : > { %p1294_p11 = pnand %p1292_p3, %p2006_p10  ;;  %s1298_s8 = scalar_lea.vmem %s1297_s5, 128 }
  0x7d   : > { %p1299_p13 = scmp.lt.s32.totalorder %s1721_s18, %s1297_s5  ;;  %p1300_p12 = scmp.lt.s32.totalorder %s1298_s8, %s1291_s11 }
  0x7e   : > { %p1295_p1 = pneg %p1294_p11 }
  0x7f   : > { %p1301_p6 = por %p1300_p12, %p1299_p13 }
  0x81   : > { %p1302_p4 = pnand %p1301_p6, %p1295_p1 }
  0x83   : > { %1305 = shalt.err (!%p1302_p4)
}
  0x84   : > { %s2007_s9 = sld [smem:[#allocation24_spill]]  ;;  %s2008_s6 = sld [smem:[#allocation25_spill]] }
  0x8a   : > { %1064 = dma.hbm_to_vmem [thread:$0]  (!%p1599_p8), %s1719_s4, 64, %s1721_s18, %s2007_s9  }
  0x8b   : > { %p2009_p2 = scmp.ne.s32.totalorder %s2008_s6, 0 }
  0x8c   : > { %s2010_s29 = sld [smem:[#allocation17_spill]] (!%p2009_p2)  ;;  %s2011_s27 = sld [smem:[#allocation27_spill]] (!%p2009_p2) }
  0x8d   : > { %233 = sbr.rel (%p2009_p2) target bundleno = 906 (0x38a), region = 32 }
  0x92   : > { %s1775_s30 = sand.u32 (!%p2009_p2), 1, %s2010_s29   ;;  %p2012_p5 = scmp.ne.s32.totalorder (!%p2009_p2), %s2011_s27, 0 }
  0x93   : > { %s900_s19 = sshll.u32 (!%p2009_p2), %s1775_s30, 2  ;;  %s236_s10 = scalar_lea.sflag (!%p2009_p2), [#allocation6], %s1775_s30 }
  0x94   : > { %s239_s25 = scalar_lea.vmem [#allocation5], %s900_s19 }
  0x95   : > { %1387 = dma.done.wait (%p2012_p5), %s236_s10, 64  }
  0x96   : > { %1389 = vsyncadd (%p2012_p5), %s236_s10, 4294967232  ;;  %s2013_s15 = sld [smem:[#allocation21_spill]]  ;;  %s2015_s18 = sld [smem:[#allocation22_spill]] }
  0x97   : > { %s2014_s3 = sld [smem:[#allocation15_spill]] }
  0x9c   : > { %s244_s4 = sand.u32 1, %s2013_s15   ;;  %p2016_p8 = scmp.ne.s32.totalorder %s2015_s18, 0 }
  0x9d   : > { %s246_s16 = sand.u32 1, %s2014_s3   ;;  %s245_s12 = scalar_lea.sflag [#allocation9], %s244_s4 }
  0x9e   : > { %s1785_s20 = sshll.u32 %s246_s16, 2 }
  0x9f   : > { %s248_s1 = scalar_lea.vmem [#allocation8], %s1785_s20 }
  0xa0   : > { %1391 = dma.done.wait (%p2016_p8), %s245_s12, 128  }
  0xa1   : > { %1393 = vsyncadd (%p2016_p8), %s245_s12, 4294967168  ;;  %s257_s11 = scalar_lea.vmem [#allocation10], %s1785_s20  ;;  %s1793_s7 = scalar_lea.vmem [#allocation11], %s900_s19 }
  0xa2   : > { %s2017_s5 = sld [smem:[#allocation18_spill]] }
  0xa8   : > { %p904_p0 = scmp.ne.s32.totalorder %s2017_s5, 0 }
  0xa9   : > { %v1453_v0 = vmov (!%p904_p0), -inf   ;;  %v1454_v1 = vmov (!%p904_p0), 0.0  }
  0xaa   : > { %293 = sbr.rel (%p904_p0) target bundleno = 177 (0xb1), region = 48  ;;  %294 = vst [vmem:[#allocation2] sm:$0x1] (!%p904_p0), %v1453_v0  ;;  %295 = vst [vmem:[#allocation3] sm:$0x1] (!%p904_p0), %v1454_v1 }
  0xab   : > { %296 = vst [vmem:[#allocation4] sm:$0xf] (!%p904_p0), %v1454_v1 }
  0xb1 PF: > { %v299_v2 = vld [vmem:[%s248_s1] sm:$0xf]  ;;  %v297_v3 = vld [vmem:[%s239_s25] sm:$0xf]  ;;  %vm381_vm0 = vcmask 1043456   ;;  %vm332_vm1 = vcmask 31744   ;;  %v557_v56 = vlaneseq }
  0xb2   : > { %300 = vxpose.xlu0.b32.start.end [1/1] (short) %v299_v2, 128  ;;  %v298_v4 = vmul.f32 0.5, %v297_v3  ;;  %v1455_v21 = vmov 0.0|0.0   ;;  %vm1456_vm2 = vmmov 0   ;;  %v1457_v26 = vmov 0.0   ;;  %v530_v61 = vld [vmem:[#allocation2] sm:$0x1] }
  0xb3   : > { %1023 = vmatprep.subr.bf16.mxu1 %v1455_v21  ;;  %1020 = vmatprep.mubr.msk.f32.mxu1 %vm1456_vm2, %v1457_v26  ;;  %v558_v59 = vshrl.u32 %v557_v56, 7  ;;  %s2018_s8 = sld [smem:[#allocation18_spill]] }
  0xb4   : > { %962 = vmatprep.subr.msk.mxu0 %vm381_vm0, %v298_v4 }
  0xb5   : > { %963 = vmatpush3.msk.msra.mxu0 %vm381_vm0, %v298_v4  ;;  %v1837_v63 = vsub.s32 0, %v558_v59 }
  0xb9   : > { %p922_p7 = scmp.ne.s32.totalorder %s2018_s8, 1 }
 0x132   : > { %v316_v5 = vpop.trf.xlu0 }
 0x133   : > { %964 = vmatprep.mubr.msk.f32.mxu0 %vm332_vm1, %v316_v5 }
 0x136   : > { %v317_v6 = vpop.trf.xlu0 }
 0x137   : > { %965 = vmatmul.mubr.msk.f32.vlgmr.msra.gmra.mrb[0].mxu0 %vm332_vm1, %v317_v6 }
 0x13a   : > { %v318_v7 = vpop.trf.xlu0 }
 0x13b   : > { %967 = vmatprep.mubr.msk.f32.mxu0 %vm332_vm1, %v318_v7 }
 0x13e   : > { %v319_v8 = vpop.trf.xlu0 }
 0x13f   : > { %968 = vmatmul.mubr.msk.f32.gmra.mrb[2].mxu0 %vm332_vm1, %v319_v8 }
 0x142   : > { %v320_v9 = vpop.trf.xlu0 }
 0x143   : > { %970 = vmatprep.mubr.msk.f32.mxu0 %vm332_vm1, %v320_v9 }
 0x146   : > { %v321_v10 = vpop.trf.xlu0 }
 0x147   : > { %971 = vmatmul.mubr.msk.f32.gmra.mrb[4].mxu0 %vm332_vm1, %v321_v10 }
 0x14a   : > { %v322_v11 = vpop.trf.xlu0 }
 0x14b   : > { %973 = vmatprep.mubr.msk.f32.mxu0 %vm332_vm1, %v322_v11 }
 0x14e   : > { %v323_v12 = vpop.trf.xlu0 }
 0x14f   : > { %974 = vmatmul.mubr.msk.f32.gmra.mrb[6].mxu0 %vm332_vm1, %v323_v12 }
 0x152   : > { %v324_v13 = vpop.trf.xlu0 }
 0x153   : > { %976 = vmatprep.mubr.msk.f32.mxu0 %vm332_vm1, %v324_v13 }
 0x156   : > { %v325_v14 = vpop.trf.xlu0 }
 0x157   : > { %977 = vmatmul.mubr.msk.f32.gmra.mrb[8].mxu0 %vm332_vm1, %v325_v14 }
 0x15a   : > { %v326_v15 = vpop.trf.xlu0 }
 0x15b   : > { %979 = vmatprep.mubr.msk.f32.mxu0 %vm332_vm1, %v326_v15 }
 0x15e   : > { %v327_v16 = vpop.trf.xlu0 }
 0x15f   : > { %980 = vmatmul.mubr.msk.f32.gmra.mrb[10].mxu0 %vm332_vm1, %v327_v16 }
 0x162   : > { %v328_v17 = vpop.trf.xlu0 }
 0x163   : > { %982 = vmatprep.mubr.msk.f32.mxu0 %vm332_vm1, %v328_v17 }
 0x166   : > { %v329_v18 = vpop.trf.xlu0 }
 0x167   : > { %983 = vmatmul.mubr.msk.f32.gmra.mrb[12].mxu0 %vm332_vm1, %v329_v18 }
 0x16a   : > { %v330_v19 = vpop.trf.xlu0 }
 0x16b   : > { %985 = vmatprep.mubr.msk.f32.mxu0 %vm332_vm1, %v330_v19 }
 0x16e   : > { %v331_v20 = vpop.trf.xlu0 }
 0x16f   : > { %986 = vmatmul.mubr.msk.f32.gmra.mrb[14].mxu0 %vm332_vm1, %v331_v20 }
 0x20a   : > { %v1813_v22 = vpop.f32.mrb[0].mxu0 }
 0x20b   : > { %v451_v23 = vpop.f32.mrb[1].mxu0 }
 0x212   : > { %v1815_v24 = vpop.f32.mrb[2].mxu0 }
 0x213   : > { %v461_v25 = vpop.f32.mrb[3].mxu0 }
 0x21a   : > { %v1817_v27 = vpop.f32.mrb[4].mxu0 }
 0x21b   : > { %v532_v28 = vmax.f32 %v1813_v22, %v1817_v27  ;;  %v471_v29 = vpop.f32.mrb[5].mxu0 }
 0x21c   : > { %v531_v30 = vmax.f32 %v451_v23, %v471_v29 }
 0x222   : > { %v1821_v31 = vpop.f32.mrb[6].mxu0 }
 0x223   : > { %v534_v32 = vmax.f32 %v1815_v24, %v1821_v31  ;;  %v481_v33 = vpop.f32.mrb[7].mxu0 }
 0x224   : > { %v533_v34 = vmax.f32 %v461_v25, %v481_v33 }
 0x22a   : > { %v1825_v35 = vpop.f32.mrb[8].mxu0 }
 0x22b   : > { %v536_v36 = vmax.f32 %v532_v28, %v1825_v35  ;;  %v491_v37 = vpop.f32.mrb[9].mxu0 }
 0x22c   : > { %v535_v38 = vmax.f32 %v531_v30, %v491_v37 }
 0x232   : > { %v1828_v39 = vpop.f32.mrb[10].mxu0 }
 0x233   : > { %v538_v40 = vmax.f32 %v534_v32, %v1828_v39  ;;  %v501_v41 = vpop.f32.mrb[11].mxu0 }
 0x234   : > { %v537_v42 = vmax.f32 %v533_v34, %v501_v41 }
 0x23a   : > { %v1831_v43 = vpop.f32.mrb[12].mxu0 }
 0x23b   : > { %v540_v44 = vmax.f32 %v536_v36, %v1831_v43  ;;  %v511_v45 = vpop.f32.mrb[13].mxu0 }
 0x23c   : > { %v539_v46 = vmax.f32 %v535_v38, %v511_v45 }
 0x23e   : > { %v543_v47 = vmax.f32 %v539_v46, %v540_v44 }
 0x242   : > { %v1834_v48 = vpop.f32.mrb[14].mxu0 }
 0x243   : > { %v542_v49 = vmax.f32 %v538_v40, %v1834_v48  ;;  %v521_v50 = vpop.f32.mrb[15].mxu0 }
 0x244   : > { %v541_v51 = vmax.f32 %v537_v42, %v521_v50 }
 0x246   : > { %v544_v52 = vmax.f32 %v541_v51, %v542_v49 }
 0x248   : > { %v545_v53 = vmax.f32 %v543_v47, %v544_v52 }
 0x24a   : > { %v546_v54 = vrot.slane %v545_v53, 4 }
 0x24c   : > { %v547_v55 = vmax.f32 %v545_v53, %v546_v54 }
 0x24e   : > { %v548_v57 = vrot.slane %v547_v55, 2 }
 0x250   : > { %v549_v58 = vmax.f32 %v547_v55, %v548_v57 }
 0x252   : > { %v550_v60 = vrot.slane %v549_v58, 1 }
 0x254   : > { %v551_v62 = vmax.f32 %v549_v58, %v550_v60 }
 0x256   : > { %v552_v0 = vmax.f32 %v530_v61, %v551_v62 }
 0x258   : > { %v560_v1 = vrot.slane %v552_v0, %v1837_v63  ;;  %716 = vst [vmem:[#allocation2] sm:$0x1] %v552_v0  ;;  %v553_v32 = vsub.f32 %v530_v61, %v552_v0 }
 0x25a   : > { %v562_v2 = vsub.f32 %v451_v23, %v560_v1  ;;  %v563_v3 = vsub.f32 %v1813_v22, %v560_v1  ;;  %v564_v4 = vsub.f32 %v461_v25, %v560_v1  ;;  %v565_v5 = vsub.f32 %v1815_v24, %v560_v1 }
 0x25b   : > { %v566_v6 = vsub.f32 %v471_v29, %v560_v1  ;;  %v567_v7 = vsub.f32 %v1817_v27, %v560_v1  ;;  %v568_v8 = vsub.f32 %v481_v33, %v560_v1  ;;  %v569_v9 = vsub.f32 %v1821_v31, %v560_v1 }
 0x25c   : > { %v570_v10 = vsub.f32 %v491_v37, %v560_v1  ;;  %v571_v11 = vsub.f32 %v1825_v35, %v560_v1  ;;  %v572_v12 = vsub.f32 %v501_v41, %v560_v1  ;;  %v573_v13 = vsub.f32 %v1828_v39, %v560_v1 }
 0x25d   : > { %v574_v14 = vsub.f32 %v511_v45, %v560_v1  ;;  %v575_v15 = vsub.f32 %v1831_v43, %v560_v1  ;;  %v576_v16 = vsub.f32 %v521_v50, %v560_v1  ;;  %v577_v17 = vsub.f32 %v1834_v48, %v560_v1 }
 0x25e   : > { %v578_v18 = vmul.f32 1.442695, %v562_v2  ;;  %v580_v19 = vmul.f32 1.442695, %v563_v3  ;;  %v582_v20 = vmul.f32 1.442695, %v564_v4 }
 0x25f   : > { %v584_v22 = vmul.f32 1.442695, %v565_v5  ;;  %v586_v23 = vmul.f32 1.442695, %v566_v6  ;;  %v588_v24 = vmul.f32 1.442695, %v567_v7 }
 0x260   : > { %1180 = vpow2.f32 %v578_v18  ;;  %v590_v25 = vmul.f32 1.442695, %v568_v8  ;;  %v592_v26 = vmul.f32 1.442695, %v569_v9  ;;  %v594_v27 = vmul.f32 1.442695, %v570_v10 }
 0x261   : > { %1182 = vpow2.f32 %v580_v19  ;;  %v596_v28 = vmul.f32 1.442695, %v571_v11  ;;  %v598_v29 = vmul.f32 1.442695, %v572_v12  ;;  %v600_v30 = vmul.f32 1.442695, %v573_v13 }
 0x262   : > { %1184 = vpow2.f32 %v582_v20  ;;  %v602_v31 = vmul.f32 1.442695, %v574_v14  ;;  %v604_v33 = vmul.f32 1.442695, %v575_v15  ;;  %v606_v35 = vmul.f32 1.442695, %v576_v16 }
 0x263   : > { %1186 = vpow2.f32 %v584_v22  ;;  %v608_v37 = vmul.f32 1.442695, %v577_v17  ;;  %v554_v41 = vmul.f32 1.442695, %v553_v32  ;;  %v635_v16 = vld [vmem:[%s257_s11] sm:$0xf] }
 0x264   : > { %1188 = vpow2.f32 %v586_v23  ;;  %v610_v20 = vld [vmem:[#allocation3] sm:$0x1] }
 0x265   : > { %1190 = vpow2.f32 %v588_v24 }
 0x266   : > { %1192 = vpow2.f32 %v590_v25 }
 0x267   : > { %1194 = vpow2.f32 %v592_v26  ;;  %v706_v26 = vld [vmem:[#allocation4] sm:$0xf] }
 0x268   : > { %1196 = vpow2.f32 %v594_v27 }
 0x269   : > { %1198 = vpow2.f32 %v596_v28 }
 0x26a   : > { %v1181_v34 = vpop.eup %1180  ;;  %1200 = vpow2.f32 %v598_v29 }
 0x26b   : > { %v1183_v36 = vpop.eup %1182  ;;  %1202 = vpow2.f32 %v600_v30 }
 0x26c   : > { %v1185_v38 = vpop.eup %1184  ;;  %1204 = vpow2.f32 %v602_v31  ;;  %v612_v39 = vadd.f32 %v1183_v36, %v1181_v34  ;;  %v1024_v40 = vpack.c.bf16 %v1183_v36, %v1181_v34 }
 0x26d   : > { %v1187_v42 = vpop.eup %1186  ;;  %1206 = vpow2.f32 %v604_v33 }
 0x26e   : > { %v1189_v43 = vpop.eup %1188  ;;  %1208 = vpow2.f32 %v606_v35  ;;  %v613_v44 = vadd.f32 %v1185_v38, %v612_v39  ;;  %1025 = vmatpush3.bf16.msra.mxu1 %v1024_v40  ;;  %v1027_v45 = vpack.c.bf16 %v1187_v42, %v1185_v38 }
 0x26f   : > { %v1191_v46 = vpop.eup %1190  ;;  %1210 = vpow2.f32 %v608_v37  ;;  %1026 = vmatprep.subr.bf16.mxu1 %v1455_v21 }
 0x270   : > { %v1193_v47 = vpop.eup %1192  ;;  %v614_v48 = vadd.f32 %v1187_v42, %v613_v44  ;;  %v1030_v49 = vpack.c.bf16 %v1191_v46, %v1189_v43  ;;  %1212 = vpow2.f32 %v554_v41 }
 0x271   : > { %v1195_v50 = vpop.eup %1194 }
 0x272   : > { %v1197_v51 = vpop.eup %1196  ;;  %v615_v52 = vadd.f32 %v1189_v43, %v614_v48  ;;  %1028 = vmatpush3.bf16.msra.mxu1 %v1027_v45  ;;  %v1033_v53 = vpack.c.bf16 %v1195_v50, %v1193_v47 }
 0x273   : > { %v1199_v54 = vpop.eup %1198  ;;  %1029 = vmatprep.subr.bf16.mxu1 %v1455_v21 }
 0x274   : > { %v1201_v55 = vpop.eup %1200  ;;  %v616_v56 = vadd.f32 %v1191_v46, %v615_v52  ;;  %v1036_v57 = vpack.c.bf16 %v1199_v54, %v1197_v51 }
 0x275   : > { %v1203_v58 = vpop.eup %1202 }
 0x276   : > { %v1205_v59 = vpop.eup %1204  ;;  %v617_v60 = vadd.f32 %v1193_v47, %v616_v56  ;;  %1031 = vmatpush3.bf16.msra.mxu1 %v1030_v49  ;;  %v1039_v61 = vpack.c.bf16 %v1203_v58, %v1201_v55 }
 0x277   : > { %v1207_v62 = vpop.eup %1206  ;;  %1032 = vmatprep.subr.bf16.mxu1 %v1455_v21 }
 0x278   : > { %v1209_v0 = vpop.eup %1208  ;;  %v618_v1 = vadd.f32 %v1195_v50, %v617_v60  ;;  %v1042_v2 = vpack.c.bf16 %v1207_v62, %v1205_v59 }
 0x279   : > { %v1211_v3 = vpop.eup %1210 }
 0x27a   : > { %v1213_v4 = vpop.eup %1212  ;;  %v619_v5 = vadd.f32 %v1197_v51, %v618_v1  ;;  %1034 = vmatpush3.bf16.msra.mxu1 %v1033_v53  ;;  %v1045_v6 = vpack.c.bf16 %v1211_v3, %v1209_v0 }
 0x27b   : > { %1035 = vmatprep.subr.bf16.mxu1 %v1455_v21  ;;  %v711_v7 = vrot.slane %v1213_v4, %v1837_v63  ;;  %v611_v24 = vmul.f32 %v1213_v4, %v610_v20 }
 0x27c   : > { %v620_v8 = vadd.f32 %v1199_v54, %v619_v5 }
 0x27d   : > { %v713_v27 = vmul.f32 %v711_v7, %v706_v26 }
 0x27e   : > { %v621_v9 = vadd.f32 %v1201_v55, %v620_v8  ;;  %1037 = vmatpush3.bf16.msra.mxu1 %v1036_v57 }
 0x27f   : > { %1038 = vmatprep.subr.bf16.mxu1 %v1455_v21 }
 0x280   : > { %v622_v10 = vadd.f32 %v1203_v58, %v621_v9 }
 0x282   : > { %v623_v11 = vadd.f32 %v1205_v59, %v622_v10  ;;  %1040 = vmatpush3.bf16.msra.mxu1 %v1039_v61 }
 0x283   : > { %1041 = vmatprep.subr.bf16.mxu1 %v1455_v21 }
 0x284   : > { %v624_v12 = vadd.f32 %v1207_v62, %v623_v11 }
 0x286   : > { %v625_v13 = vadd.f32 %v1209_v0, %v624_v12  ;;  %1043 = vmatpush3.bf16.msra.mxu1 %v1042_v2 }
 0x287   : > { %1044 = vmatprep.subr.bf16.mxu1 %v1455_v21 }
 0x288   : > { %v626_v14 = vadd.f32 %v1211_v3, %v625_v13 }
 0x28a   : > { %v627_v15 = vrot.slane %v626_v14, 4  ;;  %1046 = vmatpush3.bf16.msra.mxu1 %v1045_v6 }
 0x28c   : > { %v628_v17 = vadd.f32 %v627_v15, %v626_v14 }
 0x28d   : > { %1021 = vmatmul.mubr.f32.vlgmr.msra.gmra.mrb[0].mxu1 %v635_v16 }
 0x28e   : > { %v629_v18 = vrot.slane %v628_v17, 2 }
 0x290   : > { %v630_v19 = vadd.f32 %v629_v18, %v628_v17 }
 0x292   : > { %v631_v22 = vrot.slane %v630_v19, 1 }
 0x294   : > { %v632_v23 = vadd.f32 %v631_v22, %v630_v19 }
 0x296   : > { %v633_v25 = vadd.f32 %v632_v23, %v611_v24 }
 0x298   : > { %634 = vst [vmem:[#allocation3] sm:$0x1] %v633_v25 }
 0x29f   : > { %v721_v30 = vld [vmem:[#allocation3] sm:$0x1] (!%p922_p7) }
 0x2a0   : > { %1214 = vrcp.f32 (!%p922_p7), %v721_v30 }
 0x2aa   : > { %v1215_v31 = vpop.eup (!%p922_p7), %1214 }
 0x2ab   : > { %v728_v33 = vrot.slane (!%p922_p7), %v1215_v31, %v1837_v63 }
 0x35d   : > { %720 = sbr.rel (%p922_p7) target bundleno = 878 (0x36e), region = 52 }
 0x360   : > { %v702_v28 = vpop.f32.mrb[0].mxu1 }
 0x361   : > { %v714_v29 = vadd.f32 %v713_v27, %v702_v28  ;;  %v1022_v21 = vpop.f32.mrb[1].mxu1 }
 0x363   : > { %715 = vst [vmem:[#allocation4] sm:$0xf] %v714_v29 }
 0x36a   : > { %v723_v32 = vld [vmem:[#allocation4] sm:$0xf] }
 0x36b   : > { %v730_v34 = vmul.f32 %v728_v33, %v723_v32 }
 0x36d   : > { %731 = vst [vmem:[%s1793_s7] sm:$0xf] %v730_v34 }
 0x36e PF: > { %s2019_s9 = sld [smem:[#allocation20_spill]]  ;;  %s2020_s6 = sld [smem:[#allocation19_spill]] }
 0x36f   : > { %s2021_s29 = sld [smem:[#allocation28_spill]]  ;;  %s748_s10 = sshll.u32 %s1793_s7, 4  ;;  %s1864_s10 = int_to_ptr.vmem [resolvable:$true] %s748_s10 }
 0x370   : > { %s2022_s18 = sld [smem:[#allocation32_spill]]  ;;  %s733_s20 = scalar_lea.sflag [#allocation7], %s1775_s30 }
 0x371   : > { %s1306_s12 = scalar_lea.vmem %s1864_s10, 64  ;;  %s1458_s1 = smov [#allocation11]  }
 0x372   : > { %p1307_p9 = scmp.ne.s32.totalorder %s1864_s10, %s1306_s12  ;;  %s1310_s11 = sshll.u32 %s1458_s1, 4  ;;  %s1311_s11 = int_to_ptr.vmem [resolvable:$false] %s1310_s11 }
 0x373   : > { %s1312_s7 = scalar_lea.vmem %s1311_s11, 128  ;;  %p1313_p1 = scmp.lt.s32.totalorder %s1864_s10, %s1311_s11 }
 0x374   : > { %s924_s27 = sshll.u32 %s2019_s9, 1  ;;  %p1314_p13 = scmp.lt.s32.totalorder %s1312_s7, %s1306_s12 }
 0x375   : > { %s744_s19 = sadd.s32 %s2020_s6, %s924_s27  ;;  %p2024_p3 = scmp.ne.s32.totalorder %s2021_s29, 0 }
 0x376   : > { %s925_s25 = sshll.u32 %s744_s19, 6  ;;  %s2023_s4 = smov %s2022_s18 }
 0x377   : > { %s746_s16 = scalar_lea.hbm %s2022_s18, %s925_s25  ;;  %p1308_p10 = pnand %p1307_p9, %p2024_p3 }
 0x378   : > { %p1315_p12 = por %p1314_p13, %p1313_p1 }
 0x379   : > { %p1309_p11 = pneg %p1308_p10 }
 0x37b   : > { %p1316_p6 = pnand %p1315_p12, %p1309_p11 }
 0x37d   : > { %1319 = shalt.err (!%p1316_p6)
}
 0x37e   : > { %s1320_s5 = scalar_lea.hbm %s746_s16, 64  ;;  %s1324_s9 = scalar_lea.hbm %s2023_s4, 256 }
 0x37f   : > { %p1321_p4 = scmp.ne.s32.totalorder %s746_s16, %s1320_s5  ;;  %p1325_p8 = scmp.lt.u32.totalorder %s746_s16, %s2023_s4 }
 0x380   : > { %p1326_p0 = scmp.lt.u32.totalorder %s1324_s9, %s1320_s5  ;;  %p1328_p9 = scmp.lt.u32.totalorder %s1320_s5, %s746_s16 }
 0x381   : > { %p1322_p2 = pnand %p1321_p4, %p2024_p3 }
 0x382   : > { %p1327_p7 = por %p1326_p0, %p1325_p8 }
 0x383   : > { %p1323_p5 = pneg %p1322_p2 }
 0x384   : > { %p1329_p10 = por %p1328_p9, %p1327_p7 }
 0x386   : > { %p1330_p11 = pnand %p1329_p10, %p1323_p5 }
 0x388   : > { %1333 = shalt.err (!%p1330_p11)
}
 0x389   : > { %1053 = dma.vmem_to_hbm [thread:$0]  (%p2024_p3), %s1864_s10, 64, %s746_s16, %s733_s20  }
 0x38a PF: > { %s2025_s19 = sld [smem:[#allocation16_spill]]  ;;  %s2026_s25 = sld [smem:[#allocation30_spill]] }
 0x38b   : > { %p1070_p1 = scmp.ge.s32.totalorder %s1448_s24, 2 }
 0x390   : > { %s760_s15 = sand.u32 1, %s2025_s19   ;;  %p2027_p13 = scmp.ne.s32.totalorder %s2026_s25, 0 }
 0x391   : > { %s761_s3 = scalar_lea.sflag [#allocation7], %s760_s15 }
 0x392   : > { %p1066_p12 = pnand %p1070_p1, %p2027_p13 }
 0x394   : > { %1395 = dma.done.wait (!%p1066_p12), %s761_s3, 64  }
 0x395   : > { %1397 = vsyncadd (!%p1066_p12), %s761_s3, 4294967232  ;;  %s22_s24 = sadd.s32 1, %s1448_s24   ;;  %s2029_s12 = sld [smem:[#allocation15_spill]] }
 0x396   : > { %p1891_p6 = scmp.ge.s32.totalorder %s22_s24, 10   ;;  %s2030_s15 = sld [smem:[#allocation17_spill]] }
 0x397   : > { %s2031_s29 = smov %s1691_s13  ;;  %s2032_s10 = sld [smem:[#allocation26_spill]] }
 0x398   : > { %s2033_s1 = sld [smem:[#allocation29_spill]]  ;;  %s2035_s13 = smov %s1408_s14 }
 0x399   : > { %s2036_s14 = smov %s1696_s28  ;;  %s2037_s16 = smov %s1420_s17 }
 0x39a   : > { %s2038_s17 = smov %s2031_s29  ;;  %s2039_s18 = smov %s1436_s21 }
 0x39b   : > { %s2040_s19 = smov %s1440_s22  ;;  %s2041_s20 = smov %s1444_s23 }
 0x39c   : > { %s2042_s21 = smov %s2046_s26  ;;  %21 = sbr.rel (!%p1891_p6) target bundleno = 15 (0xf), region = 109 }
 0x39d   : > { %s2043_s22 = smov %s2032_s10 }
 0x39e   : > { %s2044_s23 = smov %s2033_s1 }
 0x3a3   :  { %766 = vsyncpa [#allocation6], 1 }
 0x3a4   :  { %768 = vsyncpa [#allocation6 + $0x1], 1 }
 0x3a5   :  { %769 = vsyncpa [#allocation9], 1 }
 0x3a6   :  { %771 = vsyncpa [#allocation9 + $0x1], 1 }
 0x3a7   :  { %772 = vsyncpa [#allocation7], 1 }
 0x3a8   :  { %774 = vsyncpa [#allocation7 + $0x1], 1 }

</bundles_post_ra>
